<compile_context>
chip_gen: v7x
topology: tpu7x:2x2x1
jax: 0.10.0
libtpu: 0.0.40
codegen_flags: <defaults>
</compile_context>

<pallas_src>
import jax
import jax.numpy as jnp
from jax.experimental import pallas as pl
from jax.experimental.pallas import tpu as pltpu


def _round_up(x, m):
    return ((x + m - 1) // m) * m


def _pick_tile(desired, total):
    """Largest multiple of 128 that is <= desired and divides total (total % 128 == 0)."""
    t = min(desired, total)
    t = max(128, (t // 128) * 128)
    while total % t:
        t -= 128
    return t


def gin_kernel(a_ref, x_ref, w_ref, b_ref, o_ref, acc_ref):
    # a_ref : (tile_n, tile_k)  bf16  rows/cols of (A + I) for this (node, k) tile
    # x_ref : (tile_k, F_pad)   f32   K-slice of node features for this batch element
    # w_ref : (F_pad, F_pad)    f32   linear weight, stored (in, out) = W_pt.T
    # b_ref : (1, F_pad)        f32   bias
    # o_ref : (tile_n, F_pad)         output tile (resident across the k axis)
    # acc_ref:(tile_n, F_pad)   f32   VMEM accumulator for (A + I) @ X
    k = pl.program_id(2)

    @pl.when(k == 0)
    def _init():
        acc_ref[...] = jnp.zeros_like(acc_ref)

    # Partial neighbour+self aggregation: acc += A_tile @ X_tile  (f32 MXU acc).
    acc_ref[...] += jnp.dot(a_ref[...].astype(jnp.float32), x_ref[...],
                            preferred_element_type=jnp.float32)

    @pl.when(k == pl.num_programs(2) - 1)
    def _finalize():
        h = acc_ref[...]
        # Linear + bias + ReLU epilogue (bias kept 2D; broadcasts over rows).
        y = jnp.dot(h, w_ref[...], preferred_element_type=jnp.float32) + b_ref[...]
        o_ref[...] = jnp.maximum(y, 0.0).astype(o_ref.dtype)


def gin_conv_forward(A, X, W, b, *, tile_n=256, tile_k=512):
    """GINConv forward: relu((X + A @ X) @ W + b) == relu(((A + I) @ X) @ W + b).

    A: (B, N, N) float32 adjacency
    X: (B, N, F) float32 node features
    W: (F, F)    float32 weight, stored transposed vs PyTorch (in, out)
    b: (F,) or (1, F) float32 bias
    """
    B, N, F = X.shape
    assert A.shape == (B, N, N)
    b = b.reshape(1, -1)

    # Lane-dense padding: node and feature dims padded to multiples of 128 so
    # every matmul operand and the output block are unmasked, MXU-filling tiles.
    N_pad = _round_up(N, 128)
    F_pad = _round_up(F, 128)
    tile_n = _pick_tile(tile_n, N_pad)
    tile_k = _pick_tile(tile_k, N_pad)
    assert tile_n % 128 == 0 and N_pad % tile_n == 0
    assert tile_k % 128 == 0 and N_pad % tile_k == 0

    dt = X.dtype

    # Fold the self term: (A + I) @ X == X + A @ X. Entries are {0,1,2}, so the
    # bf16 adjacency stream is exact while halving its HBM traffic.
    A_hat = A + jnp.eye(N, dtype=A.dtype)[None, :, :]
    A_p = jnp.zeros((B, N_pad, N_pad), jnp.bfloat16)
    A_p = A_p.at[:, :N, :N].set(A_hat.astype(jnp.bfloat16))
    X_p = jnp.zeros((B, N_pad, F_pad), dt).at[:, :N, :F].set(X)
    W_p = jnp.zeros((F_pad, F_pad), dt).at[:F, :F].set(W)
    b_p = jnp.zeros((1, F_pad), dt).at[:, :F].set(b)

    grid = (B, N_pad // tile_n, N_pad // tile_k)

    flops = B * (2 * N_pad * N_pad * F_pad + 2 * N_pad * F_pad * F_pad)
    bytes_accessed = (2 * A_p.size                      # bf16 adjacency
                      + 4 * (X_p.size + W_p.size + b_p.size + B * N_pad * F_pad))

    out = pl.pallas_call(
        gin_kernel,
        out_shape=jax.ShapeDtypeStruct((B, N_pad, F_pad), dt),
        grid_spec=pltpu.PrefetchScalarGridSpec(
            num_scalar_prefetch=0,
            grid=grid,
            in_specs=[
                # (A + I) tile: streams over both node and reduction axes.
                pl.BlockSpec((None, tile_n, tile_k),
                             lambda bi, ni, ki: (bi, ni, ki)),
                # K-slice of X: streams over the reduction axis only.
                pl.BlockSpec((None, tile_k, F_pad),
                             lambda bi, ni, ki: (bi, ki, 0)),
                # Weight / bias: constant block index -> fetched once, revisited.
                # TODO(synk): column-tile W (extra grid axis) if F_pad >= ~2048.
                pl.BlockSpec((F_pad, F_pad), lambda bi, ni, ki: (0, 0)),
                pl.BlockSpec((1, F_pad), lambda bi, ni, ki: (0, 0)),
            ],
            # Output block index is constant across k -> resident accumulator
            # target, written once in the k==last epilogue.
            out_specs=pl.BlockSpec((None, tile_n, F_pad),
                                   lambda bi, ni, ki: (bi, ni, 0)),
            scratch_shapes=[pltpu.VMEM((tile_n, F_pad), jnp.float32)],
        ),
        compiler_params=pltpu.CompilerParams(
            dimension_semantics=("parallel", "parallel", "arbitrary"),
            vmem_limit_bytes=56 * 1024 * 1024,
        ),
        cost_estimate=pl.CostEstimate(flops=flops, transcendentals=0,
                                      bytes_accessed=bytes_accessed),
    )(A_p, X_p, W_p, b_p)

    return out[:, :N, :F]


def init_gin_params(key, hidden_dim, dtype=jnp.float32):
    """torch.nn.Linear-style init: U(-1/sqrt(fan_in), +1/sqrt(fan_in))."""
    kw, kb = jax.random.split(key)
    bound = 1.0 / jnp.sqrt(hidden_dim)
    # Stored as (in, out) so y = x @ W + b  ==  torch: x @ W_pt.T + b.
    W = jax.random.uniform(kw, (hidden_dim, hidden_dim), dtype, -bound, bound)
    b = jax.random.uniform(kb, (hidden_dim,), dtype, -bound, bound)
    return W, b


def gin_conv_reference(A, X, W, b):
    """Pure-JAX reference matching the PyTorch forward (full f32 precision)."""
    hp = jax.lax.Precision.HIGHEST
    H = X + jnp.einsum("bij,bjf->bif", A, X, precision=hp)
    Y = jnp.einsum("bif,fg->big", H, W, precision=hp) + b.reshape(1, 1, -1)
    return jnp.maximum(Y, 0.0)


if __name__ == "__main__":
    key = jax.random.PRNGKey(0)
    k_a, k_x, k_p = jax.random.split(key, 3)

    # Small shapes consistent with GINConv(hidden_dim): batch=2, nodes=16, features=32.
    B, N, hidden_dim = 2, 16, 32

    A = jax.random.bernoulli(k_a, 0.3, (B, N, N)).astype(jnp.float32)
    X = jax.random.normal(k_x, (B, N, hidden_dim), dtype=jnp.float32)
    W, b = init_gin_params(k_p, hidden_dim)

    out = jax.block_until_ready(gin_conv_forward(A, X, W, b))

    ref = gin_conv_reference(A, X, W, b)
    assert out.shape == (B, N, hidden_dim)
    assert jnp.allclose(out, ref, atol=1e-4, rtol=1e-4), "mismatch vs reference"

    print("KERNEL_OK")
</pallas_src>

<mosaic_0001>
module attributes {stable_mosaic.version = 11 : i64} {
  func.func @gin_kernel(%arg0: i32, %arg1: i32, %arg2: i32, %arg3: memref<1x128x128xbf16, #tpu.memory_space<vmem>>, %arg4: memref<1x128x128xf32, #tpu.memory_space<vmem>>, %arg5: memref<128x128xf32, #tpu.memory_space<vmem>>, %arg6: memref<1x128xf32, #tpu.memory_space<vmem>>, %arg7: memref<1x128x128xf32, #tpu.memory_space<vmem>>, %arg8: memref<128x128xf32, #tpu.memory_space<vmem>>) attributes {dimension_semantics = [#tpu.dimension_semantics<parallel>, #tpu.dimension_semantics<parallel>, #tpu.dimension_semantics<arbitrary>], iteration_bounds = array<i64: 2, 1, 1>, scalar_prefetch = 0 : i64, scratch_operands = 1 : i64, tpu.core_type = #tpu.core_type<tc>, window_params = [{transform_indices = @transform_0, window_bounds = array<i64: 1, 128, 128>}, {transform_indices = @transform_1, window_bounds = array<i64: 1, 128, 128>}, {pipeline_mode = #tpu.pipeline_mode<synchronous>, transform_indices = @transform_2, window_bounds = array<i64: 128, 128>}, {pipeline_mode = #tpu.pipeline_mode<synchronous>, transform_indices = @transform_3, window_bounds = array<i64: 1, 128>}, {transform_indices = @transform_4, window_bounds = array<i64: 1, 128, 128>}]} {
    %c0_i32 = arith.constant 0 : i32
    %0 = arith.cmpi eq, %arg2, %c0_i32 : i32
    %1 = arith.extui %0 : i1 to i32
    %c0_i32_0 = arith.constant 0 : i32
    %2 = arith.cmpi ne, %1, %c0_i32_0 : i32
    scf.if %2 {
      %cst_12 = arith.constant 0.000000e+00 : f32
      %15 = vector.broadcast %cst_12 : f32 to vector<128x128xf32>
      %c0_13 = arith.constant 0 : index
      %c0_14 = arith.constant 0 : index
      %16 = vector.load %arg8[%c0_13, %c0_14] : memref<128x128xf32, #tpu.memory_space<vmem>>, vector<128x128xf32>
      tpu.vector_store %arg8[%c0_13, %c0_14], %15 {strides = array<i32>} : memref<128x128xf32, #tpu.memory_space<vmem>>, vector<128x128xf32>,
    } else {
    }
    %c0 = arith.constant 0 : index
    %c0_1 = arith.constant 0 : index
    %3 = vector.load %arg8[%c0, %c0_1] : memref<128x128xf32, #tpu.memory_space<vmem>>, vector<128x128xf32>
    %c0_2 = arith.constant 0 : index
    %c0_3 = arith.constant 0 : index
    %c0_4 = arith.constant 0 : index
    %4 = vector.load %arg3[%c0_2, %c0_3, %c0_4] : memref<1x128x128xbf16, #tpu.memory_space<vmem>>, vector<1x128x128xbf16>
    %5 = vector.shape_cast %4 : vector<1x128x128xbf16> to vector<128x128xbf16>
    %6 = arith.extf %5 : vector<128x128xbf16> to vector<128x128xf32>
    %c0_5 = arith.constant 0 : index
    %c0_6 = arith.constant 0 : index
    %c0_7 = arith.constant 0 : index
    %7 = vector.load %arg4[%c0_5, %c0_6, %c0_7] : memref<1x128x128xf32, #tpu.memory_space<vmem>>, vector<1x128x128xf32>
    %8 = vector.shape_cast %7 : vector<1x128x128xf32> to vector<128x128xf32>
    %cst = arith.constant dense<0.000000e+00> : vector<128x128xf32>
    %9 = tpu.matmul %6, %8, %cst {dimension_numbers = #tpu.dot_dimension_numbers<[1], [0], [0], [1], [0, 0, 1, 1], [], []>} : vector<128x128xf32>, vector<128x128xf32>, vector<128x128xf32> -> vector<128x128xf32>
    %10 = arith.addf %3, %9 : vector<128x128xf32>
    %c0_8 = arith.constant 0 : index
    %c0_9 = arith.constant 0 : index
    %11 = vector.load %arg8[%c0_8, %c0_9] : memref<128x128xf32, #tpu.memory_space<vmem>>, vector<128x128xf32>
    tpu.vector_store %arg8[%c0_8, %c0_9], %10 {strides = array<i32>} : memref<128x128xf32, #tpu.memory_space<vmem>>, vector<128x128xf32>,
    %c0_i32_10 = arith.constant 0 : i32
    %12 = arith.cmpi eq, %arg2, %c0_i32_10 : i32
    %13 = arith.extui %12 : i1 to i32
    %c0_i32_11 = arith.constant 0 : i32
    %14 = arith.cmpi ne, %13, %c0_i32_11 : i32
    scf.if %14 {
      %c0_12 = arith.constant 0 : index
      %c0_13 = arith.constant 0 : index
      %15 = vector.load %arg8[%c0_12, %c0_13] : memref<128x128xf32, #tpu.memory_space<vmem>>, vector<128x128xf32>
      %c0_14 = arith.constant 0 : index
      %c0_15 = arith.constant 0 : index
      %16 = vector.load %arg5[%c0_14, %c0_15] : memref<128x128xf32, #tpu.memory_space<vmem>>, vector<128x128xf32>
      %cst_16 = arith.constant dense<0.000000e+00> : vector<128x128xf32>
      %17 = tpu.matmul %15, %16, %cst_16 {dimension_numbers = #tpu.dot_dimension_numbers<[1], [0], [0], [1], [0, 0, 1, 1], [], []>} : vector<128x128xf32>, vector<128x128xf32>, vector<128x128xf32> -> vector<128x128xf32>
      %c0_17 = arith.constant 0 : index
      %c0_18 = arith.constant 0 : index
      %18 = vector.load %arg6[%c0_17, %c0_18] : memref<1x128xf32, #tpu.memory_space<vmem>>, vector<1x128xf32>
      %19 = vector.broadcast %18 : vector<1x128xf32> to vector<128x128xf32>
      %20 = arith.addf %17, %19 : vector<128x128xf32>
      %cst_19 = arith.constant 0.000000e+00 : f32
      %21 = vector.broadcast %cst_19 : f32 to vector<128x128xf32>
      %22 = arith.maximumf %20, %21 : vector<128x128xf32>
      %c0_20 = arith.constant 0 : index
      %c0_21 = arith.constant 0 : index
      %c0_22 = arith.constant 0 : index
      %23 = vector.load %arg7[%c0_20, %c0_21, %c0_22] : memref<1x128x128xf32, #tpu.memory_space<vmem>>, vector<1x128x128xf32>
      %24 = vector.shape_cast %23 : vector<1x128x128xf32> to vector<128x128xf32>
      %25 = vector.shape_cast %22 : vector<128x128xf32> to vector<1x128x128xf32>
      tpu.vector_store %arg7[%c0_20, %c0_21, %c0_22], %25 {strides = array<i32>} : memref<1x128x128xf32, #tpu.memory_space<vmem>>, vector<1x128x128xf32>,
    } else {
    }
    return
  }
  func.func @transform_0(%arg0: i32, %arg1: i32, %arg2: i32) -> (i32, i32, i32) {
    %c0_i32 = arith.constant 0 : i32
    return %arg0, %arg1, %arg2 : i32, i32, i32
  }
  func.func @transform_1(%arg0: i32, %arg1: i32, %arg2: i32) -> (i32, i32, i32) {
    %c0_i32 = arith.constant 0 : i32
    %c0_i32_0 = arith.constant 0 : i32
    return %arg0, %arg2, %c0_i32 : i32, i32, i32
  }
  func.func @transform_2(%arg0: i32, %arg1: i32, %arg2: i32) -> (i32, i32) {
    %c0_i32 = arith.constant 0 : i32
    %c0_i32_0 = arith.constant 0 : i32
    %c0_i32_1 = arith.constant 0 : i32
    return %c0_i32, %c0_i32_0 : i32, i32
  }
  func.func @transform_3(%arg0: i32, %arg1: i32, %arg2: i32) -> (i32, i32) {
    %c0_i32 = arith.constant 0 : i32
    %c0_i32_0 = arith.constant 0 : i32
    %c0_i32_1 = arith.constant 0 : i32
    return %c0_i32, %c0_i32_0 : i32, i32
  }
  func.func @transform_4(%arg0: i32, %arg1: i32, %arg2: i32) -> (i32, i32, i32) {
    %c0_i32 = arith.constant 0 : i32
    %c0_i32_0 = arith.constant 0 : i32
    return %arg0, %arg1, %c0_i32 : i32, i32, i32
  }
}

</mosaic_0001>

<bundles_post_ra>
// kernel: tpu_custom_call.1
= control target key start
LH: loop header
LB: loop body
LE: loop exit
PB: predicated region body
PF: predicated region fallthrough
CT: control target
= control target key end

     0   :  { %s1874_s0 = inlined_call_operand.hbm [shape: bf16[2,128,128], index: 0, kind: input, shape index: {}]   ;;  %s1875_s1 = inlined_call_operand.hbm [shape: f32[2,128,128], index: 1, kind: input, shape index: {}]   ;;  %s1876_s2 = inlined_call_operand.hbm [shape: f32[128,128], index: 2, kind: input, shape index: {}]   ;;  %s1877_s3 = inlined_call_operand.vmem [shape: f32[1,128], index: 3, kind: input, shape index: {}]   ;;  %s1878_s4 = inlined_call_operand.hbm [shape: f32[2,128,128], index: 4, kind: output, shape index: {}]  }
   0x1   :  { %1885 = sst [smem:[#allocation16_spill]] %s1874_s0 }
   0x2   :  { %1886 = sst [smem:[#allocation17_spill]] %s1876_s2 }
   0x3   :  { %9 = vsyncpa [#allocation4], 0 }
   0x4   :  { %11 = vsyncpa [#allocation4 + $0x1], 0 }
   0x5   :  { %12 = vsyncpa [#allocation7], 0 }
   0x6   :  { %14 = vsyncpa [#allocation7 + $0x1], 0 }
   0x7   :  { %15 = vsyncpa [#allocation5], 0 }
   0x8   :  { %17 = vsyncpa [#allocation5 + $0x1], 0  ;;  %s1530_s15 = smov 0   ;;  %s1532_s16 = smov 0  }
   0x9   :  { %s1534_s17 = smov 0   ;;  %s1536_s18 = smov 0  }
   0xa   :  { %s1538_s19 = smov 0   ;;  %s1540_s20 = smov 0  }
   0xb LB: > { %s1561_s21 = sadd.s32 4294967295, %s1493_s20   ;;  %s928_s22 = sadd.s32 4294967294, %s1493_s20   ;;  %s1493_s20 = sphi %s1540_s20, %s23_s20   ;;  %s1489_s19 = sphi %s1538_s19, %s1914_s19   ;;  %s1485_s18 = sphi %s1536_s18, %s1913_s18   ;;  %s1481_s17 = sphi %s1534_s17, %s1912_s17   ;;  %s1477_s16 = sphi %s1532_s16, %s1911_s16   ;;  %s1473_s15 = sphi %s1530_s15, %s1910_s15  }
   0xc   : > { %p66_p0 = scmp.ne.s32.totalorder %s1477_s16, %s1473_s15  ;;  %p1879_p1 = scmp.eq.s32.totalorder %s1561_s21, 0 }
   0xd   : > { %p168_p3 = scmp.eq.s32.totalorder %s928_s22, 1  ;;  %p929_p5 = scmp.ge.s32.totalorder %s1493_s20, 1 }
   0xe   : > { %p1570_p4 = por %p1879_p1, %p66_p0  ;;  %p175_p7 = scmp.lt.s32.totalorder %s1493_s20, 3 }
   0xf   : > { %p1575_p6 = por %p168_p3, %p66_p0  ;;  %s1495_s26 = smov [#allocation8]  }
  0x10   : > { %s1887_s23 = scalar_select %p1570_p4, 1, 0 }
  0x11   : > { %s1888_s24 = scalar_select %p1575_p6, 1, 0 }
  0x12   : > { %p1580_p8 = pnand %p929_p5, %p175_p7  ;;  %s187_s27 = sshll.u32 %s1495_s26, 4  ;;  %s188_s27 = int_to_ptr.vmem [resolvable:$true] %s187_s27 }
  0x13   : > { %s42_s29 = sadd.s32 1, %s1489_s19  ;;  %s1891_s2 = sld [smem:[#allocation17_spill]] }
  0x14   : > { %s1889_s25 = scalar_select %p1580_p8, 1, 0 }
  0x15   : > { %p1241_p9 = pneg %p1580_p8 }
  0x17   : > { %p1589_p11 = pnand %p1241_p9, %p1879_p1 }
  0x19   : > { %s1315_s6 = scalar_lea.hbm %s1891_s2, 2048  ;;  %p1317_p13 = pneg %p1589_p11 }
  0x1a   : > { %p1316_p12 = scmp.ne.s32.totalorder %s1891_s2, %s1315_s6  ;;  %p1322_p5 = scmp.lt.u32.totalorder %s1315_s6, %s1891_s2 }
  0x1c   : > { %p1318_p0 = pnand %p1317_p13, %p1316_p12 }
  0x1e   : > { %p1319_p3 = pneg %p1318_p0 }
  0x20   : > { %p1324_p7 = pnand %p1322_p5, %p1319_p3 }
  0x22   : > { %1327 = shalt.err (!%p1324_p7)
}
  0x23   : > { %s1328_s11 = scalar_lea.vmem %s188_s27, 2048  ;;  %p1336_p2 = scmp.lt.s32.totalorder %s188_s27, %s188_s27 }
  0x24   : > { %p1329_p9 = scmp.ne.s32.totalorder %s188_s27, %s1328_s11  ;;  %p1337_p6 = scmp.lt.s32.totalorder %s1328_s11, %s1328_s11 }
  0x26   : > { %p1331_p10 = pnand %p1329_p9, %p1317_p13  ;;  %p1338_p4 = por %p1337_p6, %p1336_p2 }
  0x28   : > { %p1332_p1 = pneg %p1331_p10 }
  0x2a   : > { %p1339_p8 = pnand %p1338_p4, %p1332_p1 }
  0x2c   : > { %1342 = shalt.err (!%p1339_p8)
}
  0x2d   : > { %s1882_s12 = smov 128   ;;  %s1883_s13 = smov 8  }
  0x2e   : > { %1244 = dma.hbm_to_vmem [thread:$0]  (!%p1589_p11), %s1891_s2, 2048, %s188_s27, [#allocation7], %s1882_s12, %s1882_s12, %s1883_s13  }
  0x2f   : > { %p44_p1 = scmp.ge.s32.totalorder %s42_s29, 2  ;;  %s53_s26 = sadd.s32 1, %s1481_s17 }
  0x30   : > { %p60_p2 = scmp.ne.s32.totalorder %s1481_s17, %s1477_s16  ;;  %p61_p4 = scmp.eq.s32.totalorder %s1493_s20, 0 }
  0x31   : > { %s1916_s29 = smov (%p44_p1, %s42_s29), 0  ;;  %p1894_p8 = scmp.eq.s32.totalorder %s1561_s21, 1 }
  0x32   : > { %1892 = sst [smem:[#allocation14_spill]] %s1916_s29  ;;  %p1619_p6 = por %p61_p4, %p60_p2 }
  0x33   : > { %p1625_p10 = por %p1894_p8, %p60_p2  ;;  %s46_s5 = ssub.s32 %s1489_s19, %s1916_s29 }
  0x34   : > { %p1257_p11 = scmp.lt.s32.totalorder %s1493_s20, 2  ;;  %p51_p12 = scmp.eq.s32.totalorder %s46_s5, 0 }
  0x35   : > { %s1633_s27 = sand.u32 1, %s1481_s17   ;;  %s949_s8 = sshll.u32 %s1489_s19, 10 }
  0x36   : > { %s932_s6 = sshll.u32 %s1633_s27, 6  ;;  %s1897_s0 = sld [smem:[#allocation16_spill]] }
  0x37   : > { %s1637_s7 = scalar_select %p51_p12, %s1481_s17, %s53_s26  }
  0x38   : > { %s208_s14 = scalar_lea.vmem [#allocation3], %s932_s6  ;;  %p1649_p13 = pnand %p1257_p11, %p1619_p6 }
  0x39   : > { %1896 = sst [smem:[#allocation15_spill]] %s1637_s7  ;;  %s218_s22 = sshll.u32 %s208_s14, 4  ;;  %s1645_s22 = int_to_ptr.vmem [resolvable:$true] %s218_s22 }
  0x3a   : > { %s205_s12 = scalar_lea.sflag [#allocation4], %s1633_s27  ;;  %p1345_p3 = pneg %p1649_p13 }
  0x3c   : > { %s1643_s11 = scalar_lea.hbm %s1897_s0, %s949_s8  ;;  %s1348_s30 = scalar_lea.hbm %s1897_s0, 2048 }
  0x3d   : > { %s1343_s9 = scalar_lea.hbm %s1643_s11, 1024  ;;  %p1349_p9 = scmp.lt.u32.totalorder %s1643_s11, %s1897_s0 }
  0x3e   : > { %p1344_p0 = scmp.ne.s32.totalorder %s1643_s11, %s1343_s9  ;;  %p1350_p1 = scmp.lt.u32.totalorder %s1348_s30, %s1343_s9 }
  0x3f   : > { %p1352_p4 = scmp.lt.u32.totalorder %s1343_s9, %s1643_s11 }
  0x40   : > { %p1346_p5 = pnand %p1345_p3, %p1344_p0  ;;  %p1351_p2 = por %p1350_p1, %p1349_p9 }
  0x42   : > { %p1347_p7 = pneg %p1346_p5  ;;  %p1353_p6 = por %p1352_p4, %p1351_p2 }
  0x44   : > { %p1354_p8 = pnand %p1353_p6, %p1347_p7 }
  0x46   : > { %1357 = shalt.err (!%p1354_p8)
}
  0x47   : > { %s1358_s13 = scalar_lea.vmem %s1645_s22, 1024  ;;  %s1498_s6 = smov [#allocation3]  }
  0x48   : > { %p1359_p11 = scmp.ne.s32.totalorder %s1645_s22, %s1358_s13  ;;  %s1363_s8 = sshll.u32 %s1498_s6, 4  ;;  %s1364_s8 = int_to_ptr.vmem [resolvable:$false] %s1363_s8 }
  0x49   : > { %s1365_s10 = scalar_lea.vmem %s1364_s8, 2048  ;;  %p1366_p5 = scmp.lt.s32.totalorder %s1645_s22, %s1364_s8 }
  0x4a   : > { %p1361_p12 = pnand %p1359_p11, %p1345_p3  ;;  %p1367_p9 = scmp.lt.s32.totalorder %s1365_s10, %s1358_s13 }
  0x4c   : > { %p1362_p0 = pneg %p1361_p12  ;;  %p1368_p1 = por %p1367_p9, %p1366_p5 }
  0x4e   : > { %p1369_p2 = pnand %p1368_p1, %p1362_p0 }
  0x50   : > { %1372 = shalt.err (!%p1369_p2)
}
  0x51   : > { %s1499_s9 = smov 64   ;;  %s1500_s30 = smov 4  }
  0x52   : > { %1248 = dma.hbm_to_vmem [thread:$0]  (!%p1649_p13), %s1643_s11, 1024, %s1645_s22, %s205_s12, %s1499_s9, %s1499_s9, %s1500_s30  }
  0x53   : > { %s935_s14 = sshll.u32 %s1633_s27, 7  ;;  %s950_s6 = sshll.u32 %s1489_s19, 11 }
  0x54   : > { %s1687_s10 = scalar_lea.hbm %s1875_s1, %s950_s6  ;;  %s232_s26 = scalar_lea.vmem [#allocation6], %s935_s14 }
  0x55   : > { %s241_s0 = sshll.u32 %s232_s26, 4  ;;  %s1899_s2 = sand.u32 1, %s1493_s20   ;;  %s1689_s0 = int_to_ptr.vmem [resolvable:$true] %s241_s0 }
  0x56   : > { %s1693_s29 = scalar_lea.sflag [#allocation7], %s1899_s2  ;;  %s1373_s7 = scalar_lea.hbm %s1687_s10, 2048 }
  0x57   : > { %p1374_p7 = scmp.ne.s32.totalorder %s1687_s10, %s1373_s7  ;;  %s1378_s11 = scalar_lea.hbm %s1875_s1, 4096 }
  0x58   : > { %p1379_p8 = scmp.lt.u32.totalorder %s1687_s10, %s1875_s1  ;;  %p1380_p11 = scmp.lt.u32.totalorder %s1378_s11, %s1373_s7 }
  0x59   : > { %p1376_p4 = pnand %p1374_p7, %p1345_p3  ;;  %p1382_p0 = scmp.lt.u32.totalorder %s1373_s7, %s1687_s10 }
  0x5a   : > { %p1381_p12 = por %p1380_p11, %p1379_p8 }
  0x5b   : > { %p1377_p6 = pneg %p1376_p4 }
  0x5c   : > { %p1383_p5 = por %p1382_p0, %p1381_p12 }
  0x5e   : > { %p1384_p9 = pnand %p1383_p5, %p1377_p6 }
  0x60   : > { %1387 = shalt.err (!%p1384_p9)
}
  0x61   : > { %s1388_s2 = scalar_lea.vmem %s1689_s0, 2048  ;;  %s1501_s26 = smov [#allocation6]  }
  0x62   : > { %p1389_p1 = scmp.ne.s32.totalorder %s1689_s0, %s1388_s2  ;;  %s1393_s30 = sshll.u32 %s1501_s26, 4  ;;  %s1394_s30 = int_to_ptr.vmem [resolvable:$false] %s1393_s30 }
  0x63   : > { %s1395_s14 = scalar_lea.vmem %s1394_s30, 4096  ;;  %p1396_p4 = scmp.lt.s32.totalorder %s1689_s0, %s1394_s30 }
  0x64   : > { %p1391_p2 = pnand %p1389_p1, %p1345_p3  ;;  %p1397_p8 = scmp.lt.s32.totalorder %s1395_s14, %s1388_s2 }
  0x66   : > { %p1392_p7 = pneg %p1391_p2  ;;  %p1398_p11 = por %p1397_p8, %p1396_p4 }
  0x68   : > { %p1399_p12 = pnand %p1398_p11, %p1392_p7 }
  0x6a   : > { %1402 = shalt.err (!%p1399_p12)
}
  0x6b   : > { %s1900_s7 = smov 8   ;;  %s1901_s6 = smov 128  }
  0x6c   : > { %1251 = dma.hbm_to_vmem [thread:$0]  (!%p1649_p13), %s1687_s10, 2048, %s1689_s0, %s1693_s29, %s1901_s6, %s1901_s6, %s1900_s7  }
  0x6d   : > { %p1902_p3 = scmp.ne.s32.totalorder %s1889_s25, 0 }
  0x6e   : > { %s1725_s8 = sand.u32 (!%p1902_p3), 1, %s1477_s16   ;;  %p1903_p6 = scmp.ne.s32.totalorder (!%p1902_p3), %s1887_s23, 0 }
  0x6f   : > { %253 = sbr.rel (%p1902_p3) target bundleno = 634 (0x27a), region = 36  ;;  %s939_s13 = sshll.u32 (!%p1902_p3), %s1725_s8, 6 }
  0x70   : > { %s256_s12 = scalar_lea.sflag (!%p1902_p3), [#allocation4], %s1725_s8  ;;  %s1729_s27 = scalar_lea.vmem (!%p1902_p3), [#allocation3], %s939_s13 }
  0x76   : > { %1456 = dma.done.wait (%p1903_p6), %s256_s12, 1024  }
  0x77   : > { %1458 = vsyncadd (%p1903_p6), %s256_s12, 4294966272  ;;  %s264_s0 = sand.u32 1, %s1561_s21   ;;  %s940_s25 = sshll.u32 %s1725_s8, 7 }
  0x78   : > { %s265_s29 = scalar_lea.sflag [#allocation7], %s264_s0  ;;  %s1739_s5 = scalar_lea.vmem [#allocation6], %s940_s25 }
  0x79   : > { %1460 = dma.done.wait (%p1903_p6), %s265_s29, 2048  }
  0x7a   : > { %1462 = vsyncadd (%p1903_p6), %s265_s29, 4294965248  ;;  %p1904_p13 = scmp.eq.s32.totalorder %s1561_s21, 0 }
  0x7c   : > { %1464 = dma.done.wait (%p1904_p13), [#allocation7], 2048   ;;  %p1905_p0 = pmov %p1904_p13 }
  0x7d   : > { %v373_v0 = vld [vmem:[%s1739_s5] sm:$0xff]  ;;  %v374_v1 = vld [vmem:[%s1739_s5 + $0x8] sm:$0xff]  ;;  %v375_v2 = vld [vmem:[%s1739_s5 + $0x10] sm:$0xff]  ;;  %s1786_s10 = scalar_lea.vmem [#allocation9], %s940_s25  ;;  %s951_s11 = sshll.u32 %s1485_s18, 11 }
  0x7e   : > { %1466 = vsyncadd (%p1905_p0), [#allocation7], 4294965248  ;;  %v1167_v3 = vpack.c.bf16 %v374_v1, %v373_v0  ;;  %v376_v4 = vld [vmem:[%s1739_s5 + $0x18] sm:$0xff]  ;;  %v377_v6 = vld [vmem:[%s1739_s5 + $0x20] sm:$0xff]  ;;  %s801_s22 = sshll.u32 %s1786_s10, 4  ;;  %s1821_s26 = scalar_lea.hbm %s1878_s4, %s951_s11  ;;  %s1823_s22 = int_to_ptr.vmem [resolvable:$true] %s801_s22 }
  0x7f   : > { %v1171_v5 = vpack.c.bf16 %v376_v4, %v375_v2  ;;  %v378_v7 = vld [vmem:[%s1739_s5 + $0x28] sm:$0xff]  ;;  %v1756_v9 = vld [vmem:[%s1729_s27] sm:$0xff]   ;;  %v379_v10 = vld [vmem:[%s1739_s5 + $0x30] sm:$0xff]  ;;  %s786_s18 = scalar_lea.sflag [#allocation5], %s1725_s8  ;;  %s1403_s30 = scalar_lea.vmem %s1823_s22, 2048 }
  0x80   : > { %1168 = vmatprep.subr.bf16.mxu0 %v1167_v3  ;;  %v1175_v8 = vpack.c.bf16 %v378_v7, %v377_v6  ;;  %v380_v11 = vld [vmem:[%s1739_s5 + $0x38] sm:$0xff]  ;;  %v954_v12 = vunpack.c.l.bf16 %v1756_v9  ;;  %v585_v13 = vld [vmem:[#allocation8] sm:$0xff]  ;;  %v586_v14 = vld [vmem:[#allocation8 + $0x8] sm:$0xff]  ;;  %v955_v48 = vunpack.c.h.bf16 %v1756_v9  ;;  %p1404_p5 = scmp.ne.s32.totalorder %s1823_s22, %s1403_s30  ;;  %s1502_s14 = smov [#allocation9]  }
  0x81   : > { %1170 = vmatpush3.bf16.msra.mxu0 %v1167_v3  ;;  %v587_v15 = vld [vmem:[#allocation8 + $0x10] sm:$0xff]  ;;  %v1179_v16 = vpack.c.bf16 %v380_v11, %v379_v10  ;;  %v588_v17 = vld [vmem:[#allocation8 + $0x18] sm:$0xff]  ;;  %v381_v18 = vld [vmem:[%s1739_s5 + $0x40] sm:$0xff]  ;;  %v1199_v20 = vpack.c.bf16 %v586_v14, %v585_v13  ;;  %s1407_s7 = sshll.u32 %s1502_s14, 4  ;;  %s1408_s7 = int_to_ptr.vmem [resolvable:$false] %s1407_s7 }
  0x82   : > { %1172 = vmatprep.subr.bf16.mxu0 %v1171_v5  ;;  %1087 = vmatprep.mubr.f32.mxu0 %v954_v12  ;;  %v382_v19 = vld [vmem:[%s1739_s5 + $0x48] sm:$0xff]  ;;  %v1203_v21 = vpack.c.bf16 %v588_v17, %v587_v15  ;;  %v589_v22 = vld [vmem:[#allocation8 + $0x20] sm:$0xff]  ;;  %v383_v25 = vld [vmem:[%s1739_s5 + $0x50] sm:$0xff]  ;;  %p1405_p9 = pnand %p1404_p5, %p1625_p10  ;;  %s1409_s6 = scalar_lea.vmem %s1408_s7, 4096 }
  0x83   : > { %v590_v23 = vld [vmem:[#allocation8 + $0x28] sm:$0xff]  ;;  %1200 = vmatprep.subr.bf16.mxu1 %v1199_v20  ;;  %v1183_v24 = vpack.c.bf16 %v382_v19, %v381_v18  ;;  %v384_v26 = vld [vmem:[%s1739_s5 + $0x58] sm:$0xff]  ;;  %v591_v28 = vld [vmem:[#allocation8 + $0x30] sm:$0xff]  ;;  %p1410_p2 = scmp.lt.s32.totalorder %s1823_s22, %s1408_s7  ;;  %p1411_p7 = scmp.lt.s32.totalorder %s1409_s6, %s1403_s30 }
  0x84   : > { %1202 = vmatpush3.bf16.msra.mxu1 %v1199_v20  ;;  %v1207_v27 = vpack.c.bf16 %v590_v23, %v589_v22  ;;  %v592_v29 = vld [vmem:[#allocation8 + $0x38] sm:$0xff]  ;;  %v1187_v30 = vpack.c.bf16 %v384_v26, %v383_v25  ;;  %v385_v31 = vld [vmem:[%s1739_s5 + $0x60] sm:$0xff]  ;;  %v386_v32 = vld [vmem:[%s1739_s5 + $0x68] sm:$0xff]  ;;  %p1406_p1 = pneg %p1405_p9 }
  0x85   : > { %1174 = vmatpush3.bf16.msra.mxu0 %v1171_v5  ;;  %1204 = vmatprep.subr.bf16.mxu1 %v1203_v21  ;;  %v1211_v33 = vpack.c.bf16 %v592_v29, %v591_v28  ;;  %v593_v34 = vld [vmem:[#allocation8 + $0x40] sm:$0xff]  ;;  %v594_v35 = vld [vmem:[#allocation8 + $0x48] sm:$0xff]  ;;  %v1191_v36 = vpack.c.bf16 %v386_v32, %v385_v31  ;;  %v387_v37 = vld [vmem:[%s1739_s5 + $0x70] sm:$0xff]  ;;  %p1412_p4 = por %p1411_p7, %p1410_p2 }
  0x86   : > { %1176 = vmatprep.subr.bf16.mxu0 %v1175_v8  ;;  %v388_v38 = vld [vmem:[%s1739_s5 + $0x78] sm:$0xff]  ;;  %v1215_v39 = vpack.c.bf16 %v594_v35, %v593_v34  ;;  %v595_v40 = vld [vmem:[#allocation8 + $0x50] sm:$0xff]  ;;  %v597_v44 = vld [vmem:[#allocation8 + $0x60] sm:$0xff] }
  0x87   : > { %v596_v41 = vld [vmem:[#allocation8 + $0x58] sm:$0xff]  ;;  %v1195_v42 = vpack.c.bf16 %v388_v38, %v387_v37  ;;  %v598_v45 = vld [vmem:[#allocation8 + $0x68] sm:$0xff]  ;;  %v599_v49 = vld [vmem:[#allocation8 + $0x70] sm:$0xff]  ;;  %p1413_p8 = pnand %p1412_p4, %p1406_p1 }
  0x88   : > { %1206 = vmatpush3.bf16.msra.mxu1 %v1203_v21  ;;  %v1219_v43 = vpack.c.bf16 %v596_v41, %v595_v40  ;;  %v984_v46 = vld [vmem:[%s1729_s27 + $0x8] sm:$0xff]   ;;  %v1223_v47 = vpack.c.bf16 %v598_v45, %v597_v44  ;;  %v600_v50 = vld [vmem:[#allocation8 + $0x78] sm:$0xff]  ;;  %v985_v52 = vld [vmem:[%s1729_s27 + $0x10] sm:$0xff]  }
  0x89   : > { %1178 = vmatpush3.bf16.msra.mxu0 %v1175_v8  ;;  %1208 = vmatprep.subr.bf16.mxu1 %v1207_v27  ;;  %v958_v51 = vunpack.c.l.bf16 %v984_v46  ;;  %v1227_v53 = vpack.c.bf16 %v600_v50, %v599_v49  ;;  %v959_v54 = vunpack.c.h.bf16 %v984_v46  ;;  %v962_v55 = vunpack.c.l.bf16 %v985_v52  ;;  %v986_v56 = vld [vmem:[%s1729_s27 + $0x18] sm:$0xff]   ;;  %v987_v59 = vld [vmem:[%s1729_s27 + $0x20] sm:$0xff]   ;;  %v988_v62 = vld [vmem:[%s1729_s27 + $0x28] sm:$0xff]  }
  0x8a   : > { %1180 = vmatprep.subr.bf16.mxu0 %v1179_v16  ;;  %v963_v57 = vunpack.c.h.bf16 %v985_v52  ;;  %v966_v58 = vunpack.c.l.bf16 %v986_v56  ;;  %v967_v60 = vunpack.c.h.bf16 %v986_v56  ;;  %v970_v61 = vunpack.c.l.bf16 %v987_v59  ;;  %v989_v1 = vld [vmem:[%s1729_s27 + $0x30] sm:$0xff]   ;;  %v990_v4 = vld [vmem:[%s1729_s27 + $0x38] sm:$0xff]  }
  0x8b   : > { %v971_v63 = vunpack.c.h.bf16 %v987_v59  ;;  %v974_v0 = vunpack.c.l.bf16 %v988_v62  ;;  %v975_v2 = vunpack.c.h.bf16 %v988_v62  ;;  %v978_v3 = vunpack.c.l.bf16 %v989_v1 }
  0x8c   : > { %1210 = vmatpush3.bf16.msra.mxu1 %v1207_v27  ;;  %v979_v5 = vunpack.c.h.bf16 %v989_v1  ;;  %v982_v6 = vunpack.c.l.bf16 %v990_v4  ;;  %v983_v7 = vunpack.c.h.bf16 %v990_v4 }
  0x8d   : > { %1182 = vmatpush3.bf16.msra.mxu0 %v1179_v16  ;;  %1212 = vmatprep.subr.bf16.mxu1 %v1211_v33 }
  0x8e   : > { %1184 = vmatprep.subr.bf16.mxu0 %v1183_v24 }
  0x90   : > { %1214 = vmatpush3.bf16.msra.mxu1 %v1211_v33 }
  0x91   : > { %1186 = vmatpush3.bf16.msra.mxu0 %v1183_v24  ;;  %1216 = vmatprep.subr.bf16.mxu1 %v1215_v39  ;;  %v1780_v24 = vld [vmem:[%s1877_s3] ss:$0 sm:$0xff] }
  0x92   : > { %1188 = vmatprep.subr.bf16.mxu0 %v1187_v30 }
  0x94   : > { %1218 = vmatpush3.bf16.msra.mxu1 %v1215_v39 }
  0x95   : > { %1190 = vmatpush3.bf16.msra.mxu0 %v1187_v30  ;;  %1220 = vmatprep.subr.bf16.mxu1 %v1219_v43 }
  0x96   : > { %1192 = vmatprep.subr.bf16.mxu0 %v1191_v36 }
  0x98   : > { %1222 = vmatpush3.bf16.msra.mxu1 %v1219_v43 }
  0x99   : > { %1194 = vmatpush3.bf16.msra.mxu0 %v1191_v36  ;;  %1224 = vmatprep.subr.bf16.mxu1 %v1223_v47 }
  0x9a   : > { %1196 = vmatprep.subr.bf16.mxu0 %v1195_v42 }
  0x9c   : > { %1226 = vmatpush3.bf16.msra.mxu1 %v1223_v47 }
  0x9d   : > { %1198 = vmatpush3.bf16.msra.mxu0 %v1195_v42  ;;  %1228 = vmatprep.subr.bf16.mxu1 %v1227_v53 }
  0xa0   : > { %1088 = vmatmul.mubr.f32.vlgmr.msra.gmra.mrb[0].mxu0 %v955_v48  ;;  %1230 = vmatpush3.bf16.msra.mxu1 %v1227_v53 }
  0xa1   : > { %1090 = vmatprep.mubr.f32.mxu0 %v958_v51 }
  0xa4   : > { %1091 = vmatmul.mubr.f32.gmra.mrb[2].mxu0 %v959_v54 }
  0xa5   : > { %1093 = vmatprep.mubr.f32.mxu0 %v962_v55 }
  0xa8   : > { %1094 = vmatmul.mubr.f32.gmra.mrb[4].mxu0 %v963_v57 }
  0xa9   : > { %1096 = vmatprep.mubr.f32.mxu0 %v966_v58 }
  0xac   : > { %1097 = vmatmul.mubr.f32.gmra.mrb[6].mxu0 %v967_v60 }
  0xad   : > { %1099 = vmatprep.mubr.f32.mxu0 %v970_v61 }
  0xb0   : > { %1100 = vmatmul.mubr.f32.gmra.mrb[8].mxu0 %v971_v63 }
  0xb1   : > { %1102 = vmatprep.mubr.f32.mxu0 %v974_v0 }
  0xb4   : > { %1103 = vmatmul.mubr.f32.gmra.mrb[10].mxu0 %v975_v2 }
  0xb5   : > { %1105 = vmatprep.mubr.f32.mxu0 %v978_v3 }
  0xb8   : > { %1106 = vmatmul.mubr.f32.gmra.mrb[12].mxu0 %v979_v5 }
  0xb9   : > { %1108 = vmatprep.mubr.f32.mxu0 %v982_v6 }
  0xbc   : > { %1109 = vmatmul.mubr.f32.gmra.mrb[14].mxu0 %v983_v7 }
 0x173   : > { %v1089_v8 = vpop.f32.mrb[0].mxu0 }
 0x174   : > { %v455_v9 = vpop.f32.mrb[1].mxu0 }
 0x175   : > { %1143 = vmatprep.mubr.f32.mxu1 %v455_v9 }
 0x176   : > { %1144 = vmatmul.mubr.f32.vlgmr.msra.gmra.mrb[0].mxu1 %v1089_v8 }
 0x177   : > { %v1092_v10 = vpop.f32.mrb[2].mxu0 }
 0x178   : > { %v465_v11 = vpop.f32.mrb[3].mxu0 }
 0x179   : > { %1146 = vmatprep.mubr.f32.mxu1 %v465_v11 }
 0x17a   : > { %1147 = vmatmul.mubr.f32.gmra.mrb[2].mxu1 %v1092_v10 }
 0x17b   : > { %v1095_v12 = vpop.f32.mrb[4].mxu0 }
 0x17c   : > { %v475_v13 = vpop.f32.mrb[5].mxu0 }
 0x17d   : > { %1149 = vmatprep.mubr.f32.mxu1 %v475_v13 }
 0x17e   : > { %1150 = vmatmul.mubr.f32.gmra.mrb[4].mxu1 %v1095_v12 }
 0x17f   : > { %v1098_v14 = vpop.f32.mrb[6].mxu0 }
 0x180   : > { %v485_v15 = vpop.f32.mrb[7].mxu0 }
 0x181   : > { %1152 = vmatprep.mubr.f32.mxu1 %v485_v15 }
 0x182   : > { %1153 = vmatmul.mubr.f32.gmra.mrb[6].mxu1 %v1098_v14 }
 0x183   : > { %v1101_v16 = vpop.f32.mrb[8].mxu0 }
 0x184   : > { %v495_v17 = vpop.f32.mrb[9].mxu0 }
 0x185   : > { %1155 = vmatprep.mubr.f32.mxu1 %v495_v17 }
 0x186   : > { %1156 = vmatmul.mubr.f32.gmra.mrb[8].mxu1 %v1101_v16 }
 0x187   : > { %v1104_v18 = vpop.f32.mrb[10].mxu0 }
 0x188   : > { %v505_v19 = vpop.f32.mrb[11].mxu0 }
 0x189   : > { %1158 = vmatprep.mubr.f32.mxu1 %v505_v19 }
 0x18a   : > { %1159 = vmatmul.mubr.f32.gmra.mrb[10].mxu1 %v1104_v18 }
 0x18b   : > { %v1107_v20 = vpop.f32.mrb[12].mxu0 }
 0x18c   : > { %v515_v21 = vpop.f32.mrb[13].mxu0 }
 0x18d   : > { %1161 = vmatprep.mubr.f32.mxu1 %v515_v21 }
 0x18e   : > { %1162 = vmatmul.mubr.f32.gmra.mrb[12].mxu1 %v1107_v20 }
 0x18f   : > { %v1110_v22 = vpop.f32.mrb[14].mxu0 }
 0x190   : > { %v525_v23 = vpop.f32.mrb[15].mxu0 }
 0x191   : > { %1164 = vmatprep.mubr.f32.mxu1 %v525_v23 }
 0x192   : > { %1165 = vmatmul.mubr.f32.gmra.mrb[14].mxu1 %v1110_v22 }
 0x249   : > { %v1145_v25 = vpop.f32.mrb[0].mxu1 }
 0x24a   : > { %v680_v26 = vadd.f32 %v1145_v25, %v1780_v24  ;;  %v674_v27 = vpop.f32.mrb[1].mxu1 }
 0x24b   : > { %v675_v28 = vadd.f32 %v1780_v24, %v674_v27 }
 0x24c   : > { %v754_v29 = vmax.f32 %v680_v26, 0.0 }
 0x24d   : > { %v753_v30 = vmax.f32 %v675_v28, 0.0  ;;  %v1148_v31 = vpop.f32.mrb[2].mxu1 }
 0x24e   : > { %770 = vst [vmem:[%s1786_s10 + $0x8] sm:$0xff] %v754_v29  ;;  %v690_v32 = vadd.f32 %v1148_v31, %v1780_v24  ;;  %v684_v33 = vpop.f32.mrb[3].mxu1 }
 0x24f   : > { %769 = vst [vmem:[%s1786_s10] sm:$0xff] %v753_v30  ;;  %v685_v34 = vadd.f32 %v1780_v24, %v684_v33 }
 0x250   : > { %v756_v35 = vmax.f32 %v690_v32, 0.0 }
 0x251   : > { %v755_v36 = vmax.f32 %v685_v34, 0.0  ;;  %v1151_v37 = vpop.f32.mrb[4].mxu1 }
 0x252   : > { %772 = vst [vmem:[%s1786_s10 + $0x18] sm:$0xff] %v756_v35  ;;  %v700_v38 = vadd.f32 %v1151_v37, %v1780_v24  ;;  %v694_v39 = vpop.f32.mrb[5].mxu1 }
 0x253   : > { %771 = vst [vmem:[%s1786_s10 + $0x10] sm:$0xff] %v755_v36  ;;  %v695_v40 = vadd.f32 %v1780_v24, %v694_v39 }
 0x254   : > { %v758_v41 = vmax.f32 %v700_v38, 0.0 }
 0x255   : > { %v757_v42 = vmax.f32 %v695_v40, 0.0  ;;  %v1154_v43 = vpop.f32.mrb[6].mxu1 }
 0x256   : > { %774 = vst [vmem:[%s1786_s10 + $0x28] sm:$0xff] %v758_v41  ;;  %v710_v44 = vadd.f32 %v1154_v43, %v1780_v24  ;;  %v704_v45 = vpop.f32.mrb[7].mxu1 }
 0x257   : > { %773 = vst [vmem:[%s1786_s10 + $0x20] sm:$0xff] %v757_v42  ;;  %v705_v46 = vadd.f32 %v1780_v24, %v704_v45 }
 0x258   : > { %v760_v47 = vmax.f32 %v710_v44, 0.0 }
 0x259   : > { %v759_v48 = vmax.f32 %v705_v46, 0.0  ;;  %v1157_v49 = vpop.f32.mrb[8].mxu1 }
 0x25a   : > { %776 = vst [vmem:[%s1786_s10 + $0x38] sm:$0xff] %v760_v47  ;;  %v720_v50 = vadd.f32 %v1157_v49, %v1780_v24  ;;  %v714_v51 = vpop.f32.mrb[9].mxu1 }
 0x25b   : > { %775 = vst [vmem:[%s1786_s10 + $0x30] sm:$0xff] %v759_v48  ;;  %v715_v52 = vadd.f32 %v1780_v24, %v714_v51 }
 0x25c   : > { %v762_v53 = vmax.f32 %v720_v50, 0.0 }
 0x25d   : > { %v761_v54 = vmax.f32 %v715_v52, 0.0  ;;  %v1160_v55 = vpop.f32.mrb[10].mxu1 }
 0x25e   : > { %778 = vst [vmem:[%s1786_s10 + $0x48] sm:$0xff] %v762_v53  ;;  %v730_v56 = vadd.f32 %v1160_v55, %v1780_v24  ;;  %v724_v57 = vpop.f32.mrb[11].mxu1 }
 0x25f   : > { %777 = vst [vmem:[%s1786_s10 + $0x40] sm:$0xff] %v761_v54  ;;  %v725_v58 = vadd.f32 %v1780_v24, %v724_v57 }
 0x260   : > { %v764_v59 = vmax.f32 %v730_v56, 0.0 }
 0x261   : > { %v763_v60 = vmax.f32 %v725_v58, 0.0  ;;  %v1163_v61 = vpop.f32.mrb[12].mxu1 }
 0x262   : > { %780 = vst [vmem:[%s1786_s10 + $0x58] sm:$0xff] %v764_v59  ;;  %v740_v62 = vadd.f32 %v1163_v61, %v1780_v24  ;;  %v734_v63 = vpop.f32.mrb[13].mxu1 }
 0x263   : > { %779 = vst [vmem:[%s1786_s10 + $0x50] sm:$0xff] %v763_v60  ;;  %v735_v0 = vadd.f32 %v1780_v24, %v734_v63 }
 0x264   : > { %v766_v1 = vmax.f32 %v740_v62, 0.0 }
 0x265   : > { %v765_v2 = vmax.f32 %v735_v0, 0.0  ;;  %v1166_v3 = vpop.f32.mrb[14].mxu1 }
 0x266   : > { %782 = vst [vmem:[%s1786_s10 + $0x68] sm:$0xff] %v766_v1  ;;  %v750_v4 = vadd.f32 %v1166_v3, %v1780_v24  ;;  %v744_v5 = vpop.f32.mrb[15].mxu1 }
 0x267   : > { %781 = vst [vmem:[%s1786_s10 + $0x60] sm:$0xff] %v765_v2  ;;  %v745_v6 = vadd.f32 %v1780_v24, %v744_v5 }
 0x268   : > { %v768_v7 = vmax.f32 %v750_v4, 0.0 }
 0x269   : > { %v767_v8 = vmax.f32 %v745_v6, 0.0 }
 0x26a   : > { %784 = vst [vmem:[%s1786_s10 + $0x78] sm:$0xff] %v768_v7 }
 0x26b   : > { %783 = vst [vmem:[%s1786_s10 + $0x70] sm:$0xff] %v767_v8 }
 0x26c   : > { %1416 = shalt.err (!%p1413_p8)
}
 0x26d   : > { %s1417_s13 = scalar_lea.hbm %s1821_s26, 2048  ;;  %s1421_s0 = scalar_lea.hbm %s1878_s4, 4096 }
 0x26e   : > { %p1418_p11 = scmp.ne.s32.totalorder %s1821_s26, %s1417_s13  ;;  %p1422_p6 = scmp.lt.u32.totalorder %s1821_s26, %s1878_s4 }
 0x26f   : > { %p1423_p13 = scmp.lt.u32.totalorder %s1421_s0, %s1417_s13  ;;  %p1425_p5 = scmp.lt.u32.totalorder %s1417_s13, %s1821_s26 }
 0x270   : > { %p1419_p12 = pnand %p1418_p11, %p1625_p10 }
 0x271   : > { %p1424_p0 = por %p1423_p13, %p1422_p6 }
 0x272   : > { %p1420_p3 = pneg %p1419_p12 }
 0x273   : > { %p1426_p9 = por %p1425_p5, %p1424_p0 }
 0x275   : > { %p1427_p1 = pnand %p1426_p9, %p1420_p3 }
 0x277   : > { %1430 = shalt.err (!%p1427_p1)
}
 0x278   : > { %s1503_s5 = smov 128   ;;  %s1504_s21 = smov 8  }
 0x279   : > { %1239 = dma.vmem_to_hbm [thread:$0]  (%p1625_p10), %s1823_s22, 2048, %s1821_s26, %s786_s18, %s1503_s5, %s1503_s5, %s1504_s21  }
 0x27a PF: > { %s816_s23 = sand.u32 1, %s1473_s15   ;;  %p1906_p2 = scmp.ne.s32.totalorder %s1888_s24, 0 }
 0x27b   : > { %p1907_p7 = scmp.ge.s32.totalorder %s1493_s20, 2  ;;  %s817_s10 = scalar_lea.sflag [#allocation5], %s816_s23 }
 0x27d   : > { %p1253_p4 = pnand %p1907_p7, %p1906_p2 }
 0x27f   : > { %1468 = dma.done.wait (!%p1253_p4), %s817_s10, 2048  }
 0x280   : > { %1470 = vsyncadd (!%p1253_p4), %s817_s10, 4294965248  ;;  %s23_s20 = sadd.s32 1, %s1493_s20   ;;  %s1908_s11 = sld [smem:[#allocation15_spill]] }
 0x281   : > { %p20_p8 = scmp.ge.s32.totalorder %s23_s20, 4   ;;  %s1909_s28 = sld [smem:[#allocation14_spill]] }
 0x282   : > { %s1910_s15 = smov %s1477_s16  ;;  %s1911_s16 = smov %s1481_s17 }
 0x283   : > { %s1913_s18 = smov %s1489_s19  ;;  %22 = sbr.rel (!%p20_p8) target bundleno = 11 (0xb), region = 106 }
 0x286   : > { %s1912_s17 = smov %s1908_s11 }
 0x287   : > { %s1914_s19 = smov %s1909_s28 }
 0x28a   :  { %822 = vsyncpa [#allocation4], 1 }
 0x28b   :  { %824 = vsyncpa [#allocation4 + $0x1], 1 }
 0x28c   :  { %825 = vsyncpa [#allocation7], 1 }
 0x28d   :  { %827 = vsyncpa [#allocation7 + $0x1], 1 }
 0x28e   :  { %828 = vsyncpa [#allocation5], 1 }
 0x28f   :  { %830 = vsyncpa [#allocation5 + $0x1], 1 }

</bundles_post_ra>
